<compile_context>
chip_gen: v5e
topology: v5e:2x2
jax: 0.10.0
libtpu: 0.0.40
codegen_flags: <defaults>
</compile_context>

<pallas_src>
import numpy as np
import jax
import jax.numpy as jnp
from jax.experimental import pallas as pl
from jax.experimental.pallas import tpu as pltpu

NUM_CLASSES = 9
STD = 0.1
AVG = 1.0

ROW_TILE = 8           # one full sublane group -> zero sublane padding
MAX_LANE_TILE = 131072 # 8 x 131072 f32 = 4 MiB/buffer; 2x(in+out) = 16 MiB VMEM


# ---------------------------------------------------------------------------
# Pass 1: per-sample class weights (small; kept in plain jnp).
# ---------------------------------------------------------------------------
def _compute_weights(labels):
    """labels: (B, H, W) int -> (B, NUM_CLASSES) float32 weights."""
    B = labels.shape[0]
    flat = labels.reshape(B, -1).astype(jnp.int32)            # (B, HW)
    total = jnp.float32(flat.shape[1])
    class_ids = jnp.arange(NUM_CLASSES, dtype=jnp.int32)
    # (B, 9, HW) compare fused into the reduction over the last axis -> (B, 9)
    counts = jnp.sum(
        (flat[:, None, :] == class_ids[None, :, None]).astype(jnp.float32),
        axis=-1,
    )
    probs = counts / total
    present = counts > 0.0
    # hist = where(hist > 0, -log(hist), 0)
    neglog = jnp.where(present,
                       -jnp.log(jnp.maximum(probs, jnp.float32(1e-30))),
                       jnp.float32(0.0))
    n_present = jnp.sum(present.astype(jnp.float32), axis=1, keepdims=True)
    # neglog is exactly 0 for absent classes, so plain sum == masked sum
    mean = jnp.sum(neglog, axis=1, keepdims=True) / n_present
    var = jnp.sum(jnp.where(present, (neglog - mean) ** 2, jnp.float32(0.0)),
                  axis=1, keepdims=True) / n_present
    arr_std = jnp.sqrt(var)                                   # population std
    # NOTE: like the PyTorch reference, arr_std == 0 (all present classes with
    # identical counts) yields inf/nan weights; behavior kept identical.
    weight = jnp.where(neglog != 0.0,
                       (neglog - mean) / arr_std * jnp.float32(STD) + jnp.float32(AVG),
                       jnp.float32(1.0))
    return weight                                             # (B, 9) float32


# ---------------------------------------------------------------------------
# Pass 2: Pallas elementwise rescale over a row-major (B*9, HW) view.
# ---------------------------------------------------------------------------
def _rescale_kernel(w_ref, preds_ref, out_ref):
    # w_ref: (ROW_TILE, 1) f32, preds_ref / out_ref: (ROW_TILE, LANE_TILE) f32
    out_ref[...] = preds_ref[...] * w_ref[...]


def _pick_lane_tile(hw, max_tile=MAX_LANE_TILE):
    """Lane-tile choice: full dim if it fits, else a fixed 128-multiple cap."""
    if hw <= max_tile:
        return hw          # block == full dim, always legal (no (8,128) issue)
    return max_tile        # multiple of 128; ragged last block is masked


def prob_reweighting(preds, labels):
    """preds: (B, 9, H, W) float32, labels: (B, H, W) int -> (B, 9, H, W) float32."""
    B, C, H, W = preds.shape
    assert C == NUM_CLASSES
    HW = H * W
    R = B * C

    weights = _compute_weights(labels).reshape(R, 1)           # (B*9, 1) f32
    preds_2d = preds.reshape(R, HW)                            # row-major view

    lane_tile = _pick_lane_tile(HW)
    row_tile = min(ROW_TILE, R)
    grid = (pl.cdiv(R, row_tile), pl.cdiv(HW, lane_tile))

    nbytes = preds.dtype.itemsize
    cost = pl.CostEstimate(
        flops=R * HW,
        transcendentals=0,
        bytes_accessed=2 * R * HW * nbytes + R * 4,
    )

    out = pl.pallas_call(
        _rescale_kernel,
        out_shape=jax.ShapeDtypeStruct((R, HW), preds.dtype),
        grid_spec=pltpu.PrefetchScalarGridSpec(
            num_scalar_prefetch=0,
            grid=grid,
            in_specs=[
                pl.BlockSpec((row_tile, 1), lambda r, t: (r, 0)),          # weights
                pl.BlockSpec((row_tile, lane_tile), lambda r, t: (r, t)),  # preds
            ],
            out_specs=pl.BlockSpec((row_tile, lane_tile), lambda r, t: (r, t)),
        ),
        compiler_params=pltpu.CompilerParams(
            dimension_semantics=("parallel", "parallel"),
            # Explicit limit so the 16 MiB double-buffered working set also
            # fits v5e's smaller default scoped-VMEM budget.
            vmem_limit_bytes=32 * 1024 * 1024,
        ),
        cost_estimate=cost,
    )(weights, preds_2d)
    return out.reshape(B, C, H, W)


prob_reweighting_jit = jax.jit(prob_reweighting)


# ---------------------------------------------------------------------------
# Reference + test
# ---------------------------------------------------------------------------
def _numpy_ref(preds, labels, std=STD, avg=AVG):
    """Direct transcription of the PyTorch forward for verification."""
    preds = np.array(preds, dtype=np.float32).copy()
    labels = np.asarray(labels)
    for i in range(labels.shape[0]):
        hist = np.bincount(labels[i].flatten(), minlength=9)
        mask = hist > 0
        s = np.sum(hist)
        hist = hist / s
        with np.errstate(divide="ignore"):
            hist = np.where(hist > 0, -np.log(hist), 0)
        mean = np.mean(hist[mask])
        arr_std = np.std(hist[mask])
        weight = np.where(hist != 0, (hist - mean) / arr_std * std + avg, 1)
        for k in range(9):
            preds[i, k] = preds[i, k] * weight[k]
    return preds


if __name__ == "__main__":
    key = jax.random.PRNGKey(0)
    kp, kl = jax.random.split(key)

    B, H, W = 2, 16, 16
    preds = jax.random.normal(kp, (B, NUM_CLASSES, H, W), dtype=jnp.float32)
    labels = jax.random.randint(kl, (B, H, W), 0, NUM_CLASSES, dtype=jnp.int32)

    preds_np = np.asarray(preds)
    labels_np = np.asarray(labels)

    out = prob_reweighting_jit(preds, labels)
    out = jax.block_until_ready(out)

    ref = _numpy_ref(preds_np, labels_np)
    np.testing.assert_allclose(np.asarray(out), ref, rtol=1e-4, atol=1e-5)
    print("KERNEL_OK")
</pallas_src>

<mosaic_0001>
module attributes {stable_mosaic.version = 11 : i64} {
  func.func @_rescale_kernel(%arg0: i32, %arg1: i32, %arg2: memref<8x1xf32, #tpu.memory_space<vmem>>, %arg3: memref<8x256xf32, #tpu.memory_space<vmem>>, %arg4: memref<8x256xf32, #tpu.memory_space<vmem>>) attributes {dimension_semantics = [#tpu.dimension_semantics<parallel>, #tpu.dimension_semantics<parallel>], iteration_bounds = array<i64: 3, 1>, scalar_prefetch = 0 : i64, scratch_operands = 0 : i64, tpu.core_type = #tpu.core_type<tc>, window_params = [{transform_indices = @transform_0, window_bounds = array<i64: 8, 1>}, {transform_indices = @transform_1, window_bounds = array<i64: 8, 256>}, {transform_indices = @transform_2, window_bounds = array<i64: 8, 256>}]} {
    %c0 = arith.constant 0 : index
    %c0_0 = arith.constant 0 : index
    %0 = vector.load %arg3[%c0, %c0_0] : memref<8x256xf32, #tpu.memory_space<vmem>>, vector<8x256xf32>
    %c0_1 = arith.constant 0 : index
    %c0_2 = arith.constant 0 : index
    %1 = vector.load %arg2[%c0_1, %c0_2] : memref<8x1xf32, #tpu.memory_space<vmem>>, vector<8x1xf32>
    %2 = vector.broadcast %1 : vector<8x1xf32> to vector<8x256xf32>
    %3 = arith.mulf %0, %2 : vector<8x256xf32>
    %c0_3 = arith.constant 0 : index
    %c0_4 = arith.constant 0 : index
    %4 = vector.load %arg4[%c0_3, %c0_4] : memref<8x256xf32, #tpu.memory_space<vmem>>, vector<8x256xf32>
    tpu.vector_store %arg4[%c0_3, %c0_4], %3 {strides = array<i32>} : memref<8x256xf32, #tpu.memory_space<vmem>>, vector<8x256xf32>,
    return
  }
  func.func @transform_0(%arg0: i32, %arg1: i32) -> (i32, i32) {
    %c0_i32 = arith.constant 0 : i32
    %c0_i32_0 = arith.constant 0 : i32
    return %arg0, %c0_i32 : i32, i32
  }
  func.func @transform_1(%arg0: i32, %arg1: i32) -> (i32, i32) {
    %c0_i32 = arith.constant 0 : i32
    return %arg0, %arg1 : i32, i32
  }
  func.func @transform_2(%arg0: i32, %arg1: i32) -> (i32, i32) {
    %c0_i32 = arith.constant 0 : i32
    return %arg0, %arg1 : i32, i32
  }
}

</mosaic_0001>

<bundles_post_ra>
// kernel: div.1
= control target key start
LH: loop header
LB: loop body
LE: loop exit
PB: predicated region body
PF: predicated region fallthrough
CT: control target
= control target key end

     0   :  { %s50_s0 = inlined_call_operand.vmem [shape: f32[2], index: 0, kind: input, shape index: {}]   ;;  %s51_s1 = inlined_call_operand.vmem [shape: f32[2], index: 1, kind: input, shape index: {}]   ;;  %s52_s2 = inlined_call_operand.vmem [shape: f32[2], index: 2, kind: output, shape index: {}]  }
   0x1   :  { %v4_v0 = vld [vmem:[%s51_s1] sm:$0x1] }
   0x2   :  { %24 = vrcp.f32 %v4_v0  ;;  %v18_v3 = vand.u32 2147483648, %v4_v0  ;;  %vm12_vm0 = vweird.f32 %v4_v0  ;;  %v16_v5 = vand.u32 2147483647, %v4_v0  ;;  %v3_v9 = vld [vmem:[%s50_s0] sm:$0x1] }
   0x4   :  { %v19_v7 = vor.u32 1.1754944e-38, %v18_v3  ;;  %vm17_vm3 = vcmp.eq.f32.partialorder %v16_v5, 8.507059e+37 }
   0x8   :  { %v25_v1 = vpop.eup %24 }
   0x9   :  { %v8_v2 = vmul.f32 %v25_v1, %v4_v0  ;;  %vm13_vm1 = vweird.f32 %v25_v1 }
   0xa   :  { %vm14_vm2 = vmor %vm12_vm0, %vm13_vm1 }
   0xb   :  { %v9_v4 = vsub.f32 1.0, %v8_v2 }
   0xd   :  { %v10_v6 = vmul.f32 %v25_v1, %v9_v4 }
   0xf   :  { %v11_v8 = vadd.f32 %v25_v1, %v10_v6 }
  0x11   :  { %v15_v10 = vsel %vm14_vm2, %v25_v1, %v11_v8 }
  0x12   :  { %v20_v11 = vsel %vm17_vm3, %v19_v7, %v15_v10 }
  0x13   :  { %v21_v12 = vmul.f32 %v20_v11, %v3_v9 }
  0x15   :  { %23 = vst [vmem:[%s52_s2] sm:$0x1] %v21_v12 }

// kernel: eq.8
= control target key start
LH: loop header
LB: loop body
LE: loop exit
PB: predicated region body
PF: predicated region fallthrough
CT: control target
= control target key end

     0   :  { %2 = vsyncpa [#allocation1], 0  ;;  %s165_s8 = smov [#allocation0]   ;;  %s199_s0 = inlined_call_operand.hbm [shape: s32[2,16,16], index: 0, kind: input, shape index: {}]   ;;  %s200_s1 = inlined_call_operand.vmem [shape: s32[2,256], index: 1, kind: output, shape index: {}]  }
   0x1   :  { %s6_s0 = sshll.u32 %s199_s0, 4  ;;  %s8_s9 = sshll.u32 %s165_s8, 4  ;;  %s7_s0 = int_to_ptr.hbm [resolvable:$true] %s6_s0  ;;  %s9_s9 = int_to_ptr.vmem [resolvable:$true] %s8_s9 }
   0x2   :  { %11 = dma.hbm_to_vmem [thread:$0]  %s7_s0, 512, %s9_s9, [#allocation1]  }
   0x3   :  { %163 = dma.done.wait [#allocation1], 512  }
   0x4   :  { %164 = vsyncadd [#allocation1], 4294966784  ;;  %s20_s10 = smov 3  ;;  %s23_s11 = smov 12  ;;  %vm25_vm0 = vcmask 1043458   ;;  %vm15_vm1 = vcmask 130048  }
   0x5   :  { %s48_s12 = smov 3  ;;  %s51_s13 = smov 12  ;;  %v21_v0 = vld [vmem:[#allocation0 + $0x7] ss:$16 sm:%s20_s10]   ;;  %v24_v1 = vld [vmem:[#allocation0 - $0x11] ss:$16 sm:%s23_s11]  }
   0x6   :  { %s34_s14 = smov 3  ;;  %v49_v2 = vld [vmem:[#allocation0 + $0x5] ss:$16 sm:%s48_s12]   ;;  %v26_v3 = vsel %vm25_vm0, %v24_v1, %v21_v0  ;;  %v52_v4 = vld [vmem:[#allocation0 - $0x13] ss:$16 sm:%s51_s13]   ;;  %s37_s15 = smov 12 }
   0x7   :  { %s166_s16 = smov 112   ;;  %v54_v5 = vsel %vm25_vm0, %v52_v4, %v49_v2  ;;  %s62_s17 = smov 3  ;;  %v35_v6 = vld [vmem:[#allocation0 + $0x6] ss:$16 sm:%s34_s14]   ;;  %v38_v7 = vld [vmem:[#allocation0 - $0x12] ss:$16 sm:%s37_s15]  }
   0x8   :  { %27 = vrot.lane.b32.xlu0 %v26_v3, %s166_s16  ;;  %s65_s18 = smov 12  ;;  %s167_s19 = smov 80   ;;  %v63_v9 = vld [vmem:[#allocation0 + $0x4] ss:$16 sm:%s62_s17]   ;;  %v40_v13 = vsel %vm25_vm0, %v38_v7, %v35_v6  ;;  %vm29_vm2 = vcmask 1048448   ;;  %vm43_vm3 = vcmask 917248  }
   0x9   :  { %55 = vrot.lane.b32.xlu1 %v54_v5, %s167_s19  ;;  %s76_s20 = smov 3  ;;  %s79_s21 = smov 12  ;;  %v66_v10 = vld [vmem:[#allocation0 - $0x14] ss:$16 sm:%s65_s18]   ;;  %vm57_vm4 = vcmask 786048   ;;  %vm71_vm5 = vcmask 654848  }
   0xa   :  { %v77_v8 = vld [vmem:[#allocation0 + $0x3] ss:$16 sm:%s76_s20]   ;;  %v80_v11 = vld [vmem:[#allocation0 - $0x15] ss:$16 sm:%s79_s21]   ;;  %s90_s22 = smov 3  ;;  %s93_s23 = smov 12  ;;  %v68_v14 = vsel %vm25_vm0, %v66_v10, %v63_v9 }
   0xb   :  { %v82_v12 = vsel %vm25_vm0, %v80_v11, %v77_v8  ;;  %s168_s24 = smov 48   ;;  %s104_s25 = smov 3  ;;  %v91_v15 = vld [vmem:[#allocation0 + $0x2] ss:$16 sm:%s90_s22]   ;;  %v94_v16 = vld [vmem:[#allocation0 - $0x16] ss:$16 sm:%s93_s23]  }
   0xc   :  { %83 = vrot.lane.b32.xlu2 %v82_v12, %s168_s24  ;;  %s107_s26 = smov 12  ;;  %s169_s27 = smov 96   ;;  %v105_v17 = vld [vmem:[#allocation0 + $0x1] ss:$16 sm:%s104_s25]   ;;  %v96_v19 = vsel %vm25_vm0, %v94_v16, %v91_v15  ;;  %vm85_vm6 = vcmask 523648   ;;  %vm99_vm7 = vcmask 392448  }
   0xd   :  { %s170_s28 = smov 64   ;;  %v108_v18 = vld [vmem:[#allocation0 - $0x17] ss:$16 sm:%s107_s26]   ;;  %s171_s29 = smov 32   ;;  %vm113_vm8 = vcmask 261248  }
   0xe   :  { %v110_v20 = vsel %vm25_vm0, %v108_v18, %v105_v17  ;;  %s172_s30 = smov 16   ;;  %v14_v21 = vld [vmem:[#allocation0] ss:$8 sm:$0xf]  }
   0xf   :  { %16 = vst.msk [vmem:[#allocation2] ss:$8 sm:$0x3] %vm15_vm1, %v14_v21  }
  0x10   :  { %41 = vrot.lane.b32.xlu0 %v40_v13, %s169_s27  ;;  %18 = vst.msk [vmem:[#allocation2 - $0xf] ss:$8 sm:$0xc] %vm15_vm1, %v14_v21  }
  0x11   :  { %69 = vrot.lane.b32.xlu1 %v68_v14, %s170_s28 }
  0x14   :  { %97 = vrot.lane.b32.xlu2 %v96_v19, %s171_s29 }
  0x18   :  { %111 = vrot.lane.b32.xlu0 %v110_v20, %s172_s30 }
  0x66   :  { %v84_v22 = vpop.permute.xlu2 %83  }
  0x6e   :  { %v98_v23 = vpop.permute.xlu2 %97  }
  0x7a   :  { %v28_v24 = vpop.permute.xlu0 %27  }
  0x7b   :  { %30 = vst.msk [vmem:[#allocation2] sm:$0x3] %vm29_vm2, %v28_v24   ;;  %v56_v25 = vpop.permute.xlu1 %55  }
  0x7c   :  { %32 = vst.msk [vmem:[#allocation2 + $0x6] sm:$0xc] %vm29_vm2, %v28_v24  }
  0x82   :  { %v42_v26 = vpop.permute.xlu0 %41  }
  0x83   :  { %44 = vst.msk [vmem:[#allocation2] sm:$0x3] %vm43_vm3, %v42_v26   ;;  %v70_v27 = vpop.permute.xlu1 %69  }
  0x84   :  { %46 = vst.msk [vmem:[#allocation2 + $0x6] sm:$0xc] %vm43_vm3, %v42_v26  }
  0x85   :  { %58 = vst.msk [vmem:[#allocation2] sm:$0x3] %vm57_vm4, %v56_v25  }
  0x86   :  { %60 = vst.msk [vmem:[#allocation2 + $0x6] sm:$0xc] %vm57_vm4, %v56_v25  }
  0x87   :  { %72 = vst.msk [vmem:[#allocation2] sm:$0x3] %vm71_vm5, %v70_v27  }
  0x88   :  { %74 = vst.msk [vmem:[#allocation2 + $0x6] sm:$0xc] %vm71_vm5, %v70_v27  }
  0x89   :  { %86 = vst.msk [vmem:[#allocation2] sm:$0x3] %vm85_vm6, %v84_v22  }
  0x8a   :  { %88 = vst.msk [vmem:[#allocation2 + $0x6] sm:$0xc] %vm85_vm6, %v84_v22   ;;  %v112_v28 = vpop.permute.xlu0 %111  }
  0x8b   :  { %100 = vst.msk [vmem:[#allocation2] sm:$0x3] %vm99_vm7, %v98_v23  }
  0x8c   :  { %102 = vst.msk [vmem:[#allocation2 + $0x6] sm:$0xc] %vm99_vm7, %v98_v23  }
  0x8d   :  { %114 = vst.msk [vmem:[#allocation2] sm:$0x3] %vm113_vm8, %v112_v28  }
  0x8e   :  { %116 = vst.msk [vmem:[#allocation2 + $0x6] sm:$0xc] %vm113_vm8, %v112_v28  }
  0x94   :  { %v119_v29 = vld [vmem:[#allocation2] sm:$0x3] }
  0x95   :  { %122 = vst [vmem:[%s200_s1] sm:$0x3] %v119_v29  ;;  %v124_v30 = vld [vmem:[#allocation2 + $0x8] sm:$0x3] }
  0x96   :  { %130 = vst [vmem:[%s200_s1 + $0x2] sm:$0x3] %v124_v30 }
  0x97   :  { %129 = vsyncpa [#allocation1], 1 }

// kernel: prob_reweighting.1
= control target key start
LH: loop header
LB: loop body
LE: loop exit
PB: predicated region body
PF: predicated region fallthrough
CT: control target
= control target key end

     0   :  { %s391_s9 = smov 0   ;;  %s393_s10 = smov 0   ;;  %s424_s0 = inlined_call_operand.vmem [shape: f32[18,1], index: 0, kind: input, shape index: {}]   ;;  %s425_s1 = inlined_call_operand.vmem [shape: f32[18,256], index: 1, kind: input, shape index: {}]   ;;  %s426_s2 = inlined_call_operand.vmem [shape: f32[18,256], index: 2, kind: output, shape index: {}]  }
   0x1   :  { %s395_s11 = smov 0  }
   0x2 LB: > { %s24_s12 = sadd.s32 1, %s369_s10  ;;  %p315_p0 = scmp.ge.s32.totalorder %s373_s11, 1  ;;  %s373_s11 = sphi %s395_s11, %s12_s11   ;;  %s369_s10 = sphi %s393_s10, %s428_s10   ;;  %s365_s9 = sphi %s391_s9, %s427_s9  }
   0x3   : > { %p26_p1 = scmp.ge.s32.totalorder %s24_s12, 3  ;;  %p142_p2 = scmp.lt.s32.totalorder %s373_s11, 4 }
   0x5   : > { %s430_s12 = smov (%p26_p1, %s24_s12), 0  ;;  %p143_p3 = pnand %p315_p0, %p142_p2 }
   0x6   : > { %p176_p4 = scmp.lt.s32.totalorder (!%p143_p3), %s365_s9, 2 }
   0x7   : > { %146 = sbr.rel (%p143_p3) target bundleno = 135 (0x87), region = 28 }
   0xc   : > { %v375_v0 = vmov 0   ;;  %s432_s9 = smov (!%p176_p4, %s365_s9), 2 }
   0xd   : > { %350 = vset.pattern.permute.xlu0 %v375_v0  ;;  %s316_s13 = sshll.u32 %s432_s9, 3  ;;  %s323_s17 = sshll.u32 %s432_s9, 4 }
   0xe   : > { %s179_s16 = scalar_lea.vmem %s424_s0, %s316_s13  ;;  %s188_s20 = scalar_lea.vmem %s425_s1, %s323_s17 }
   0xf   : > { %v202_v1 = vld [vmem:[%s179_s16] sm:$0xff]  ;;  %v201_v3 = vld [vmem:[%s188_s20 + $0x8] sm:$0xff]  ;;  %s198_s23 = scalar_lea.vmem %s426_s2, %s323_s17 }
  0x10   : > { %205 = vperm.xlu0 %350, %v202_v1   ;;  %v200_v2 = vld [vmem:[%s188_s20] sm:$0xff] }
  0x82   : > { %v206_v4 = vpop.permute.xlu0 %205 }
  0x83   : > { %v208_v5 = vmul.f32 %v206_v4, %v200_v2  ;;  %v209_v6 = vmul.f32 %v206_v4, %v201_v3 }
  0x85   : > { %210 = vst [vmem:[%s198_s23] sm:$0xff] %v208_v5 }
  0x86   : > { %211 = vst [vmem:[%s198_s23 + $0x8] sm:$0xff] %v209_v6 }
  0x87 PF: > { %s12_s11 = sadd.s32 1, %s373_s11   ;;  %s427_s9 = smov %s369_s10 }
  0x88   : > { %p9_p5 = scmp.ge.s32.totalorder %s12_s11, 5   ;;  %s428_s10 = smov %s430_s12 }
  0x8a   :  { %11 = sbr.rel (!%p9_p5) target bundleno = 2 (0x2), region = 61 }

</bundles_post_ra>
